<compile_context>
chip_gen: v7x
topology: tpu7x:2x2x1
jax: 0.10.0
libtpu: 0.0.40
codegen_flags: <defaults>
</compile_context>

<pallas_src>
import functools

import jax
import jax.numpy as jnp
from jax.experimental import pallas as pl
from jax.experimental.pallas import tpu as pltpu

_LANE = 128


def _round_up(n, m):
    return (n + m - 1) // m * m


def mlp_kernel(x_ref, w1_ref, b1_ref, w2_ref, b2_ref, w3_ref, b3_ref, o_ref):
    # Weights arrive pre-transposed to [in, out] and zero-padded to 128-lane
    # output widths, so each layer is a plain [M,K]x[K,N] MXU matmul with an
    # f32 accumulator followed by a lane-dense (unmasked) store.
    x = x_ref[...]
    h = jax.nn.sigmoid(
        jnp.dot(x, w1_ref[...], preferred_element_type=jnp.float32) + b1_ref[...])
    h = jax.nn.sigmoid(
        jnp.dot(h, w2_ref[...], preferred_element_type=jnp.float32) + b2_ref[...])
    o = jax.nn.sigmoid(
        jnp.dot(h, w3_ref[...], preferred_element_type=jnp.float32) + b3_ref[...])
    o_ref[...] = o.astype(o_ref.dtype)


@functools.partial(jax.jit, static_argnames=("block_b",))
def mlp_forward(x, w1, b1, w2, b2, w3, b3, *, block_b=512):
    """x: [B, in]; w*: PyTorch nn.Linear layout [out, in]; b*: [out]."""
    B, in_size = x.shape
    hidden = w1.shape[0]
    out_size = w3.shape[0]
    dt = x.dtype

    hid_p = _round_up(hidden, _LANE)
    out_p = _round_up(out_size, _LANE)

    # One-time repack (tens of KiB): transpose to [in, out], zero-pad the
    # output dims to lane-dense widths.  Zero rows/columns keep the padded
    # lanes numerically inert (see module header).
    w1t = jnp.zeros((in_size, hid_p), dt).at[:, :hidden].set(w1.T.astype(dt))
    b1p = jnp.zeros((1, hid_p), dt).at[:, :hidden].set(b1.astype(dt))
    w2t = jnp.zeros((hid_p, hid_p), dt).at[:hidden, :hidden].set(w2.T.astype(dt))
    b2p = jnp.zeros((1, hid_p), dt).at[:, :hidden].set(b2.astype(dt))
    w3t = jnp.zeros((hid_p, out_p), dt).at[:hidden, :out_size].set(w3.T.astype(dt))
    b3p = jnp.zeros((1, out_p), dt).at[:, :out_size].set(b3.astype(dt))

    # Batch tile: full batch when it fits, else block_b-row tiles.
    tb = B if B <= block_b else block_b
    n_steps = pl.cdiv(B, tb)

    def resident(arr):
        # Full-array block with a constant index_map -> stays VMEM-resident
        # across all grid steps (no refetch per batch tile).
        return pl.BlockSpec(arr.shape, lambda i: (0,) * arr.ndim)

    out_padded = pl.pallas_call(
        mlp_kernel,
        out_shape=jax.ShapeDtypeStruct((B, out_p), dt),
        grid=(n_steps,),
        in_specs=[
            pl.BlockSpec((tb, in_size), lambda i: (i, 0)),  # x: batch-tiled
            resident(w1t), resident(b1p),
            resident(w2t), resident(b2p),
            resident(w3t), resident(b3p),
        ],
        out_specs=pl.BlockSpec((tb, out_p), lambda i: (i, 0)),
        compiler_params=pltpu.CompilerParams(
            # Only shard across TensorCores when there are >= 2 batch tiles.
            dimension_semantics=("parallel",) if n_steps > 1 else ("arbitrary",)),
    )(x, w1t, b1p, w2t, b2p, w3t, b3p)

    # Drop the zero-padded output lanes.
    return out_padded[:, :out_size]


def reference_forward(x, w1, b1, w2, b2, w3, b3):
    h = jax.nn.sigmoid(x @ w1.T + b1)
    h = jax.nn.sigmoid(h @ w2.T + b2)
    return jax.nn.sigmoid(h @ w3.T + b3)


if __name__ == "__main__":
    # Shapes consistent with the module: input=32, hidden=64, output=16.
    input_size, hidden_size, output_size = 32, 64, 16

    key = jax.random.PRNGKey(0)
    kx, k1, k2, k3, k4, k5, k6 = jax.random.split(key, 7)

    # nn.Linear layout: weight [out, in], bias [out].
    w1 = jax.random.normal(k1, (hidden_size, input_size), dtype=jnp.float32) * 0.1
    b1 = jax.random.normal(k2, (hidden_size,), dtype=jnp.float32) * 0.1
    w2 = jax.random.normal(k3, (hidden_size, hidden_size), dtype=jnp.float32) * 0.1
    b2 = jax.random.normal(k4, (hidden_size,), dtype=jnp.float32) * 0.1
    w3 = jax.random.normal(k5, (output_size, hidden_size), dtype=jnp.float32) * 0.1
    b3 = jax.random.normal(k6, (output_size,), dtype=jnp.float32) * 0.1

    # Case 1: B=256 -> fits one full-batch tile (single grid step).
    x1 = jax.random.normal(kx, (256, input_size), dtype=jnp.float32)
    out1 = jax.block_until_ready(mlp_forward(x1, w1, b1, w2, b2, w3, b3))
    ref1 = reference_forward(x1, w1, b1, w2, b2, w3, b3)
    assert out1.shape == (256, output_size), out1.shape
    assert jnp.allclose(out1, ref1, atol=1e-5, rtol=1e-5), "mismatch vs reference (B=256)"

    # Case 2: B=200 with 128-row tiles -> 2 grid steps incl. a partial last
    # tile (exercises Pallas' masked writeback of the final output block).
    x2 = jax.random.normal(kx, (200, input_size), dtype=jnp.float32)
    out2 = jax.block_until_ready(
        mlp_forward(x2, w1, b1, w2, b2, w3, b3, block_b=128))
    ref2 = reference_forward(x2, w1, b1, w2, b2, w3, b3)
    assert out2.shape == (200, output_size), out2.shape
    assert jnp.allclose(out2, ref2, atol=1e-5, rtol=1e-5), "mismatch vs reference (B=200)"

    print("KERNEL_OK")
</pallas_src>

<mosaic_0001>
module attributes {stable_mosaic.version = 11 : i64} {
  func.func @mlp_kernel(%arg0: i32, %arg1: memref<256x32xf32, #tpu.memory_space<vmem>>, %arg2: memref<32x128xf32, #tpu.memory_space<vmem>>, %arg3: memref<1x128xf32, #tpu.memory_space<vmem>>, %arg4: memref<128x128xf32, #tpu.memory_space<vmem>>, %arg5: memref<1x128xf32, #tpu.memory_space<vmem>>, %arg6: memref<128x128xf32, #tpu.memory_space<vmem>>, %arg7: memref<1x128xf32, #tpu.memory_space<vmem>>, %arg8: memref<256x128xf32, #tpu.memory_space<vmem>>) attributes {dimension_semantics = [#tpu.dimension_semantics<arbitrary>], iteration_bounds = array<i64: 1>, scalar_prefetch = 0 : i64, scratch_operands = 0 : i64, tpu.core_type = #tpu.core_type<tc>, window_params = [{transform_indices = @transform_0, window_bounds = array<i64: 256, 32>}, {pipeline_mode = #tpu.pipeline_mode<synchronous>, transform_indices = @transform_1, window_bounds = array<i64: 32, 128>}, {pipeline_mode = #tpu.pipeline_mode<synchronous>, transform_indices = @transform_2, window_bounds = array<i64: 1, 128>}, {pipeline_mode = #tpu.pipeline_mode<synchronous>, transform_indices = @transform_3, window_bounds = array<i64: 128, 128>}, {pipeline_mode = #tpu.pipeline_mode<synchronous>, transform_indices = @transform_4, window_bounds = array<i64: 1, 128>}, {pipeline_mode = #tpu.pipeline_mode<synchronous>, transform_indices = @transform_5, window_bounds = array<i64: 128, 128>}, {pipeline_mode = #tpu.pipeline_mode<synchronous>, transform_indices = @transform_6, window_bounds = array<i64: 1, 128>}, {transform_indices = @transform_7, window_bounds = array<i64: 256, 128>}]} {
    %c0 = arith.constant 0 : index
    %c0_0 = arith.constant 0 : index
    %0 = vector.load %arg1[%c0, %c0_0] : memref<256x32xf32, #tpu.memory_space<vmem>>, vector<256x32xf32>
    %c0_1 = arith.constant 0 : index
    %c0_2 = arith.constant 0 : index
    %1 = vector.load %arg2[%c0_1, %c0_2] : memref<32x128xf32, #tpu.memory_space<vmem>>, vector<32x128xf32>
    %cst = arith.constant dense<0.000000e+00> : vector<256x128xf32>
    %2 = tpu.matmul %0, %1, %cst {dimension_numbers = #tpu.dot_dimension_numbers<[1], [0], [0], [1], [0, 0, 1, 1], [], []>} : vector<256x32xf32>, vector<32x128xf32>, vector<256x128xf32> -> vector<256x128xf32>
    %c0_3 = arith.constant 0 : index
    %c0_4 = arith.constant 0 : index
    %3 = vector.load %arg3[%c0_3, %c0_4] : memref<1x128xf32, #tpu.memory_space<vmem>>, vector<1x128xf32>
    %4 = vector.broadcast %3 : vector<1x128xf32> to vector<256x128xf32>
    %5 = arith.addf %2, %4 : vector<256x128xf32>
    %6 = arith.negf %5 : vector<256x128xf32>
    %7 = math.exp %6 : vector<256x128xf32>
    %cst_5 = arith.constant 1.000000e+00 : f32
    %8 = vector.broadcast %cst_5 : f32 to vector<256x128xf32>
    %9 = arith.addf %8, %7 : vector<256x128xf32>
    %10 = arith.divf %8, %9 : vector<256x128xf32>
    %c0_6 = arith.constant 0 : index
    %c0_7 = arith.constant 0 : index
    %11 = vector.load %arg4[%c0_6, %c0_7] : memref<128x128xf32, #tpu.memory_space<vmem>>, vector<128x128xf32>
    %cst_8 = arith.constant dense<0.000000e+00> : vector<256x128xf32>
    %12 = tpu.matmul %10, %11, %cst_8 {dimension_numbers = #tpu.dot_dimension_numbers<[1], [0], [0], [1], [0, 0, 1, 1], [], []>} : vector<256x128xf32>, vector<128x128xf32>, vector<256x128xf32> -> vector<256x128xf32>
    %c0_9 = arith.constant 0 : index
    %c0_10 = arith.constant 0 : index
    %13 = vector.load %arg5[%c0_9, %c0_10] : memref<1x128xf32, #tpu.memory_space<vmem>>, vector<1x128xf32>
    %14 = vector.broadcast %13 : vector<1x128xf32> to vector<256x128xf32>
    %15 = arith.addf %12, %14 : vector<256x128xf32>
    %16 = arith.negf %15 : vector<256x128xf32>
    %17 = math.exp %16 : vector<256x128xf32>
    %cst_11 = arith.constant 1.000000e+00 : f32
    %18 = vector.broadcast %cst_11 : f32 to vector<256x128xf32>
    %19 = arith.addf %18, %17 : vector<256x128xf32>
    %20 = arith.divf %18, %19 : vector<256x128xf32>
    %c0_12 = arith.constant 0 : index
    %c0_13 = arith.constant 0 : index
    %21 = vector.load %arg6[%c0_12, %c0_13] : memref<128x128xf32, #tpu.memory_space<vmem>>, vector<128x128xf32>
    %cst_14 = arith.constant dense<0.000000e+00> : vector<256x128xf32>
    %22 = tpu.matmul %20, %21, %cst_14 {dimension_numbers = #tpu.dot_dimension_numbers<[1], [0], [0], [1], [0, 0, 1, 1], [], []>} : vector<256x128xf32>, vector<128x128xf32>, vector<256x128xf32> -> vector<256x128xf32>
    %c0_15 = arith.constant 0 : index
    %c0_16 = arith.constant 0 : index
    %23 = vector.load %arg7[%c0_15, %c0_16] : memref<1x128xf32, #tpu.memory_space<vmem>>, vector<1x128xf32>
    %24 = vector.broadcast %23 : vector<1x128xf32> to vector<256x128xf32>
    %25 = arith.addf %22, %24 : vector<256x128xf32>
    %26 = arith.negf %25 : vector<256x128xf32>
    %27 = math.exp %26 : vector<256x128xf32>
    %cst_17 = arith.constant 1.000000e+00 : f32
    %28 = vector.broadcast %cst_17 : f32 to vector<256x128xf32>
    %29 = arith.addf %28, %27 : vector<256x128xf32>
    %30 = arith.divf %28, %29 : vector<256x128xf32>
    %c0_18 = arith.constant 0 : index
    %c0_19 = arith.constant 0 : index
    %31 = vector.load %arg8[%c0_18, %c0_19] : memref<256x128xf32, #tpu.memory_space<vmem>>, vector<256x128xf32>
    tpu.vector_store %arg8[%c0_18, %c0_19], %30 {strides = array<i32>} : memref<256x128xf32, #tpu.memory_space<vmem>>, vector<256x128xf32>,
    return
  }
  func.func @transform_0(%arg0: i32) -> (i32, i32) {
    %c0_i32 = arith.constant 0 : i32
    %c0_i32_0 = arith.constant 0 : i32
    return %arg0, %c0_i32 : i32, i32
  }
  func.func @transform_1(%arg0: i32) -> (i32, i32) {
    %c0_i32 = arith.constant 0 : i32
    %c0_i32_0 = arith.constant 0 : i32
    %c0_i32_1 = arith.constant 0 : i32
    return %c0_i32, %c0_i32_0 : i32, i32
  }
  func.func @transform_2(%arg0: i32) -> (i32, i32) {
    %c0_i32 = arith.constant 0 : i32
    %c0_i32_0 = arith.constant 0 : i32
    %c0_i32_1 = arith.constant 0 : i32
    return %c0_i32, %c0_i32_0 : i32, i32
  }
  func.func @transform_3(%arg0: i32) -> (i32, i32) {
    %c0_i32 = arith.constant 0 : i32
    %c0_i32_0 = arith.constant 0 : i32
    %c0_i32_1 = arith.constant 0 : i32
    return %c0_i32, %c0_i32_0 : i32, i32
  }
  func.func @transform_4(%arg0: i32) -> (i32, i32) {
    %c0_i32 = arith.constant 0 : i32
    %c0_i32_0 = arith.constant 0 : i32
    %c0_i32_1 = arith.constant 0 : i32
    return %c0_i32, %c0_i32_0 : i32, i32
  }
  func.func @transform_5(%arg0: i32) -> (i32, i32) {
    %c0_i32 = arith.constant 0 : i32
    %c0_i32_0 = arith.constant 0 : i32
    %c0_i32_1 = arith.constant 0 : i32
    return %c0_i32, %c0_i32_0 : i32, i32
  }
  func.func @transform_6(%arg0: i32) -> (i32, i32) {
    %c0_i32 = arith.constant 0 : i32
    %c0_i32_0 = arith.constant 0 : i32
    %c0_i32_1 = arith.constant 0 : i32
    return %c0_i32, %c0_i32_0 : i32, i32
  }
  func.func @transform_7(%arg0: i32) -> (i32, i32) {
    %c0_i32 = arith.constant 0 : i32
    %c0_i32_0 = arith.constant 0 : i32
    return %arg0, %c0_i32 : i32, i32
  }
}

</mosaic_0001>

<bundles_post_ra>
// kernel: mlp_forward.1
= control target key start
LH: loop header
LB: loop body
LE: loop exit
PB: predicated region body
PF: predicated region fallthrough
CT: control target
= control target key end

     0   :  { %vm69_vm0 = vcmask 261120   ;;  %s2960_s1 = inlined_call_operand.vmem [shape: f32[32,128], index: 1, kind: input, shape index: {}]   ;;  %s2961_s0 = inlined_call_operand.vmem [shape: f32[256,32], index: 0, kind: input, shape index: {}]   ;;  %s2962_s3 = inlined_call_operand.vmem [shape: f32[128,128], index: 3, kind: input, shape index: {}]   ;;  %s2963_s5 = inlined_call_operand.vmem [shape: f32[128,128], index: 5, kind: input, shape index: {}]   ;;  %s2964_s2 = inlined_call_operand.vmem [shape: f32[1,128], index: 2, kind: input, shape index: {}]   ;;  %s2965_s4 = inlined_call_operand.vmem [shape: f32[1,128], index: 4, kind: input, shape index: {}]   ;;  %s2966_s6 = inlined_call_operand.vmem [shape: f32[1,128], index: 6, kind: input, shape index: {}]   ;;  %s2967_s7 = inlined_call_operand.vmem [shape: f32[256,128], index: 7, kind: output, shape index: {}]  }
   0x1   :  { %v58_v0 = vld [vmem:[%s2960_s1] sm:$0xff]  ;;  %v59_v1 = vld [vmem:[%s2960_s1 + $0x8] sm:$0xff]  ;;  %v60_v2 = vld [vmem:[%s2960_s1 + $0x10] sm:$0xff] }
   0x2   :  { %v1978_v3 = vpack.c.bf16 %v59_v1, %v58_v0  ;;  %v61_v4 = vld [vmem:[%s2960_s1 + $0x18] sm:$0xff]  ;;  %v26_v5 = vld [vmem:[%s2961_s0] sm:$0xff]  ;;  %v27_v8 = vld [vmem:[%s2961_s0 + $0x8] sm:$0xff] }
   0x3   :  { %v1982_v6 = vpack.c.bf16 %v61_v4, %v60_v2  ;;  %1770 = vmatprep.mubr.msk.f32.mxu0 %vm69_vm0, %v26_v5  ;;  %v42_v7 = vld [vmem:[%s2961_s0 + $0x80] sm:$0xff]  ;;  %v43_v9 = vld [vmem:[%s2961_s0 + $0x88] sm:$0xff]  ;;  %v28_v10 = vld [vmem:[%s2961_s0 + $0x10] sm:$0xff] }
   0x4   :  { %1979 = vmatprep.subr.bf16.mxu0 %v1978_v3  ;;  %2050 = vmatprep.subr.bf16.mxu1 %v1978_v3  ;;  %v44_v11 = vld [vmem:[%s2961_s0 + $0x90] sm:$0xff]  ;;  %v29_v12 = vld [vmem:[%s2961_s0 + $0x18] sm:$0xff]  ;;  %v583_v14 = vld [vmem:[%s2962_s3] sm:$0xff] }
   0x5   :  { %1981 = vmatpush3.bf16.msra.mxu0 %v1978_v3  ;;  %2052 = vmatpush3.bf16.msra.mxu1 %v1978_v3  ;;  %v45_v13 = vld [vmem:[%s2961_s0 + $0x98] sm:$0xff]  ;;  %v584_v15 = vld [vmem:[%s2962_s3 + $0x8] sm:$0xff]  ;;  %v30_v16 = vld [vmem:[%s2961_s0 + $0x20] sm:$0xff] }
   0x6   :  { %1983 = vmatprep.subr.bf16.mxu0 %v1982_v6  ;;  %2051 = vmatprep.subr.bf16.mxu1 %v1982_v6  ;;  %v46_v17 = vld [vmem:[%s2961_s0 + $0xa0] sm:$0xff]  ;;  %v1986_v18 = vpack.c.bf16 %v584_v15, %v583_v14  ;;  %v31_v19 = vld [vmem:[%s2961_s0 + $0x28] sm:$0xff]  ;;  %v32_v21 = vld [vmem:[%s2961_s0 + $0x30] sm:$0xff] }
   0x7   :  { %1794 = vmatprep.mubr.msk.f32.mxu1 %vm69_vm0, %v42_v7  ;;  %v47_v20 = vld [vmem:[%s2961_s0 + $0xa8] sm:$0xff]  ;;  %v48_v22 = vld [vmem:[%s2961_s0 + $0xb0] sm:$0xff]  ;;  %v33_v23 = vld [vmem:[%s2961_s0 + $0x38] sm:$0xff] }
   0x8   :  { %v49_v24 = vld [vmem:[%s2961_s0 + $0xb8] sm:$0xff]  ;;  %v34_v25 = vld [vmem:[%s2961_s0 + $0x40] sm:$0xff]  ;;  %v35_v27 = vld [vmem:[%s2961_s0 + $0x48] sm:$0xff] }
   0x9   :  { %1985 = vmatpush3.bf16.msra.mxu0 %v1982_v6  ;;  %2053 = vmatpush3.bf16.msra.mxu1 %v1982_v6  ;;  %v50_v26 = vld [vmem:[%s2961_s0 + $0xc0] sm:$0xff]  ;;  %v51_v28 = vld [vmem:[%s2961_s0 + $0xc8] sm:$0xff]  ;;  %v36_v29 = vld [vmem:[%s2961_s0 + $0x50] sm:$0xff] }
   0xa   :  { %1987 = vmatprep.subr.bf16.mxu1 %v1986_v18  ;;  %v52_v30 = vld [vmem:[%s2961_s0 + $0xd0] sm:$0xff]  ;;  %v37_v31 = vld [vmem:[%s2961_s0 + $0x58] sm:$0xff]  ;;  %v38_v33 = vld [vmem:[%s2961_s0 + $0x60] sm:$0xff] }
   0xb   :  { %v53_v32 = vld [vmem:[%s2961_s0 + $0xd8] sm:$0xff]  ;;  %v54_v34 = vld [vmem:[%s2961_s0 + $0xe0] sm:$0xff]  ;;  %v39_v35 = vld [vmem:[%s2961_s0 + $0x68] sm:$0xff] }
   0xc   :  { %1771 = vmatmul.mubr.msk.f32.vlgmr.msra.gmra.mrb[0].mxu0 %vm69_vm0, %v27_v8  ;;  %1795 = vmatmul.mubr.msk.f32.vlgmr.msra.gmra.mrb[0].mxu1 %vm69_vm0, %v43_v9  ;;  %v55_v36 = vld [vmem:[%s2961_s0 + $0xe8] sm:$0xff]  ;;  %v40_v37 = vld [vmem:[%s2961_s0 + $0x70] sm:$0xff]  ;;  %v41_v39 = vld [vmem:[%s2961_s0 + $0x78] sm:$0xff] }
   0xd   :  { %1773 = vmatprep.mubr.msk.f32.mxu0 %vm69_vm0, %v28_v10  ;;  %1797 = vmatprep.mubr.msk.f32.mxu1 %vm69_vm0, %v44_v11  ;;  %v56_v38 = vld [vmem:[%s2961_s0 + $0xf0] sm:$0xff]  ;;  %v57_v40 = vld [vmem:[%s2961_s0 + $0xf8] sm:$0xff]  ;;  %v587_v44 = vld [vmem:[%s2962_s3 + $0x20] sm:$0xff] }
   0xe   :  { %1989 = vmatpush3.bf16.msra.mxu1 %v1986_v18  ;;  %v585_v41 = vld [vmem:[%s2962_s3 + $0x10] sm:$0xff]  ;;  %v586_v42 = vld [vmem:[%s2962_s3 + $0x18] sm:$0xff]  ;;  %v588_v45 = vld [vmem:[%s2962_s3 + $0x28] sm:$0xff] }
   0xf   :  { %v1990_v43 = vpack.c.bf16 %v586_v42, %v585_v41  ;;  %v1994_v46 = vpack.c.bf16 %v588_v45, %v587_v44  ;;  %v589_v47 = vld [vmem:[%s2962_s3 + $0x30] sm:$0xff]  ;;  %v590_v48 = vld [vmem:[%s2962_s3 + $0x38] sm:$0xff]  ;;  %v591_v50 = vld [vmem:[%s2962_s3 + $0x40] sm:$0xff] }
  0x10   :  { %1774 = vmatmul.mubr.msk.f32.gmra.mrb[2].mxu0 %vm69_vm0, %v29_v12  ;;  %1798 = vmatmul.mubr.msk.f32.gmra.mrb[2].mxu1 %vm69_vm0, %v45_v13  ;;  %v1998_v49 = vpack.c.bf16 %v590_v48, %v589_v47  ;;  %v592_v51 = vld [vmem:[%s2962_s3 + $0x48] sm:$0xff]  ;;  %v593_v53 = vld [vmem:[%s2962_s3 + $0x50] sm:$0xff]  ;;  %v594_v54 = vld [vmem:[%s2962_s3 + $0x58] sm:$0xff] }
  0x11   :  { %1776 = vmatprep.mubr.msk.f32.mxu0 %vm69_vm0, %v30_v16  ;;  %1800 = vmatprep.mubr.msk.f32.mxu1 %vm69_vm0, %v46_v17  ;;  %v2002_v52 = vpack.c.bf16 %v592_v51, %v591_v50  ;;  %v2006_v55 = vpack.c.bf16 %v594_v54, %v593_v53  ;;  %v595_v56 = vld [vmem:[%s2962_s3 + $0x60] sm:$0xff]  ;;  %v596_v57 = vld [vmem:[%s2962_s3 + $0x68] sm:$0xff]  ;;  %v597_v59 = vld [vmem:[%s2962_s3 + $0x70] sm:$0xff] }
  0x12   :  { %1991 = vmatprep.subr.bf16.mxu1 %v1990_v43  ;;  %v2010_v58 = vpack.c.bf16 %v596_v57, %v595_v56  ;;  %v598_v60 = vld [vmem:[%s2962_s3 + $0x78] sm:$0xff]  ;;  %v1023_v62 = vld [vmem:[%s2963_s5] sm:$0xff]  ;;  %v1024_v63 = vld [vmem:[%s2963_s5 + $0x8] sm:$0xff] }
  0x13   :  { %1993 = vmatpush3.bf16.msra.mxu1 %v1990_v43  ;;  %v2014_v61 = vpack.c.bf16 %v598_v60, %v597_v59  ;;  %v2018_v0 = vpack.c.bf16 %v1024_v63, %v1023_v62  ;;  %v2675_v1 = vld [vmem:[%s2964_s2] ss:$0 sm:$0xff] }
  0x14   :  { %1777 = vmatmul.mubr.msk.f32.gmra.mrb[4].mxu0 %vm69_vm0, %v31_v19  ;;  %1801 = vmatmul.mubr.msk.f32.gmra.mrb[4].mxu1 %vm69_vm0, %v47_v20 }
  0x15   :  { %1779 = vmatprep.mubr.msk.f32.mxu0 %vm69_vm0, %v32_v21  ;;  %1803 = vmatprep.mubr.msk.f32.mxu1 %vm69_vm0, %v48_v22 }
  0x16   :  { %1995 = vmatprep.subr.bf16.mxu1 %v1994_v46  ;;  %2019 = vmatprep.subr.bf16.mxu0 %v2018_v0 }
  0x17   :  { %1997 = vmatpush3.bf16.msra.mxu1 %v1994_v46  ;;  %2021 = vmatpush3.bf16.msra.mxu0 %v2018_v0 }
  0x18   :  { %1780 = vmatmul.mubr.msk.f32.gmra.mrb[6].mxu0 %vm69_vm0, %v33_v23  ;;  %1804 = vmatmul.mubr.msk.f32.gmra.mrb[6].mxu1 %vm69_vm0, %v49_v24 }
  0x19   :  { %1782 = vmatprep.mubr.msk.f32.mxu0 %vm69_vm0, %v34_v25  ;;  %1806 = vmatprep.mubr.msk.f32.mxu1 %vm69_vm0, %v50_v26 }
  0x1a   :  { %1999 = vmatprep.subr.bf16.mxu1 %v1998_v49 }
  0x1b   :  { %2001 = vmatpush3.bf16.msra.mxu1 %v1998_v49 }
  0x1c   :  { %1783 = vmatmul.mubr.msk.f32.gmra.mrb[8].mxu0 %vm69_vm0, %v35_v27  ;;  %1807 = vmatmul.mubr.msk.f32.gmra.mrb[8].mxu1 %vm69_vm0, %v51_v28 }
  0x1d   :  { %1785 = vmatprep.mubr.msk.f32.mxu0 %vm69_vm0, %v36_v29  ;;  %1809 = vmatprep.mubr.msk.f32.mxu1 %vm69_vm0, %v52_v30 }
  0x1e   :  { %2003 = vmatprep.subr.bf16.mxu1 %v2002_v52 }
  0x1f   :  { %2005 = vmatpush3.bf16.msra.mxu1 %v2002_v52 }
  0x20   :  { %1786 = vmatmul.mubr.msk.f32.gmra.mrb[10].mxu0 %vm69_vm0, %v37_v31  ;;  %1810 = vmatmul.mubr.msk.f32.gmra.mrb[10].mxu1 %vm69_vm0, %v53_v32 }
  0x21   :  { %1788 = vmatprep.mubr.msk.f32.mxu0 %vm69_vm0, %v38_v33  ;;  %1812 = vmatprep.mubr.msk.f32.mxu1 %vm69_vm0, %v54_v34 }
  0x22   :  { %2007 = vmatprep.subr.bf16.mxu1 %v2006_v55 }
  0x23   :  { %2009 = vmatpush3.bf16.msra.mxu1 %v2006_v55 }
  0x24   :  { %1789 = vmatmul.mubr.msk.f32.gmra.mrb[12].mxu0 %vm69_vm0, %v39_v35  ;;  %1813 = vmatmul.mubr.msk.f32.gmra.mrb[12].mxu1 %vm69_vm0, %v55_v36 }
  0x25   :  { %1791 = vmatprep.mubr.msk.f32.mxu0 %vm69_vm0, %v40_v37  ;;  %1815 = vmatprep.mubr.msk.f32.mxu1 %vm69_vm0, %v56_v38 }
  0x26   :  { %2011 = vmatprep.subr.bf16.mxu1 %v2010_v58 }
  0x27   :  { %2013 = vmatpush3.bf16.msra.mxu1 %v2010_v58 }
  0x28   :  { %1792 = vmatmul.mubr.msk.f32.gmra.mrb[14].mxu0 %vm69_vm0, %v41_v39  ;;  %1816 = vmatmul.mubr.msk.f32.gmra.mrb[14].mxu1 %vm69_vm0, %v57_v40 }
  0x29   :  { %2015 = vmatprep.subr.bf16.mxu1 %v2014_v61 }
  0x2b   :  { %2017 = vmatpush3.bf16.msra.mxu1 %v2014_v61 }
  0xdf   :  { %v1772_v2 = vpop.f32.mrb[0].mxu0  ;;  %v1796_v3 = vpop.f32.mrb[0].mxu1 }
  0xe0   :  { %v238_v4 = vadd.f32 %v1772_v2, %v2675_v1  ;;  %v232_v5 = vpop.f32.mrb[1].mxu0  ;;  %v312_v6 = vpop.f32.mrb[1].mxu1  ;;  %v318_v17 = vadd.f32 %v1796_v3, %v2675_v1 }
  0xe1   :  { %v233_v7 = vadd.f32 %v2675_v1, %v232_v5  ;;  %v313_v20 = vadd.f32 %v2675_v1, %v312_v6 }
  0xe2   :  { %v1533_v8 = vmul.f32 -1.442695, %v238_v4  ;;  %v1549_v27 = vmul.f32 -1.442695, %v318_v17 }
  0xe3   :  { %v1532_v9 = vmul.f32 -1.442695, %v233_v7  ;;  %v1775_v10 = vpop.f32.mrb[2].mxu0  ;;  %v2679_v11 = vpop.f32.mrb[2].mxu1  ;;  %v1548_v30 = vmul.f32 -1.442695, %v313_v20 }
  0xe4   :  { %2054 = vpow2.f32 %v1533_v8  ;;  %v248_v12 = vadd.f32 %v1775_v10, %v2675_v1  ;;  %v242_v13 = vpop.f32.mrb[3].mxu0  ;;  %v322_v14 = vpop.f32.mrb[3].mxu1 }
  0xe5   :  { %2056 = vpow2.f32 %v1532_v9  ;;  %v243_v15 = vadd.f32 %v2675_v1, %v242_v13  ;;  %v323_v59 = vadd.f32 %v2675_v1, %v322_v14 }
  0xe6   :  { %v1535_v16 = vmul.f32 -1.442695, %v248_v12 }
  0xe7   :  { %v1534_v18 = vmul.f32 -1.442695, %v243_v15  ;;  %v1778_v19 = vpop.f32.mrb[4].mxu0  ;;  %v2685_v21 = vpop.f32.mrb[4].mxu1  ;;  %v1550_v13 = vmul.f32 -1.442695, %v323_v59 }
  0xe8   :  { %2058 = vpow2.f32 %v1535_v16  ;;  %v258_v22 = vadd.f32 %v1778_v19, %v2675_v1  ;;  %v252_v23 = vpop.f32.mrb[5].mxu0  ;;  %v332_v24 = vpop.f32.mrb[5].mxu1 }
  0xe9   :  { %2060 = vpow2.f32 %v1534_v18  ;;  %v253_v25 = vadd.f32 %v2675_v1, %v252_v23  ;;  %v333_v4 = vadd.f32 %v2675_v1, %v332_v24 }
  0xea   :  { %v1537_v26 = vmul.f32 -1.442695, %v258_v22 }
  0xeb   :  { %v1536_v28 = vmul.f32 -1.442695, %v253_v25  ;;  %v1781_v29 = vpop.f32.mrb[6].mxu0  ;;  %v2689_v31 = vpop.f32.mrb[6].mxu1  ;;  %v1552_v20 = vmul.f32 -1.442695, %v333_v4 }
  0xec   :  { %2062 = vpow2.f32 %v1537_v26  ;;  %v268_v32 = vadd.f32 %v1781_v29, %v2675_v1  ;;  %v262_v33 = vpop.f32.mrb[7].mxu0  ;;  %v2692_v34 = vpop.f32.mrb[7].mxu1 }
  0xed   :  { %2064 = vpow2.f32 %v1536_v28  ;;  %v263_v35 = vadd.f32 %v2675_v1, %v262_v33 }
  0xee   :  { %v2055_v36 = vpop.eup %2054  ;;  %v1539_v37 = vmul.f32 -1.442695, %v268_v32  ;;  %2066 = vpow2.f32 %v1549_v27 }
  0xef   :  { %v2057_v38 = vpop.eup %2056  ;;  %v488_v39 = vadd.f32 1.0, %v2055_v36  ;;  %v1538_v40 = vmul.f32 -1.442695, %v263_v35  ;;  %v1784_v41 = vpop.f32.mrb[8].mxu0  ;;  %2068 = vpow2.f32 %v1548_v30  ;;  %v328_v35 = vadd.f32 %v2679_v11, %v2675_v1 }
  0xf0   :  { %v487_v42 = vadd.f32 1.0, %v2057_v38  ;;  %2070 = vpow2.f32 %v1539_v37  ;;  %v278_v43 = vadd.f32 %v1784_v41, %v2675_v1  ;;  %v272_v44 = vpop.f32.mrb[9].mxu0  ;;  %v2696_v45 = vpop.f32.mrb[8].mxu1  ;;  %v338_v38 = vadd.f32 %v2685_v21, %v2675_v1 }
  0xf1   :  { %2072 = vrcp.f32 %v488_v39  ;;  %v273_v46 = vadd.f32 %v2675_v1, %v272_v44  ;;  %v2699_v47 = vpop.f32.mrb[9].mxu1  ;;  %v1551_v44 = vmul.f32 -1.442695, %v328_v35  ;;  %v358_v4 = vadd.f32 %v2696_v45, %v2675_v1 }
  0xf2   :  { %v2059_v48 = vpop.eup %2058  ;;  %2074 = vrcp.f32 %v487_v42  ;;  %v1541_v49 = vmul.f32 -1.442695, %v278_v43  ;;  %v1553_v11 = vmul.f32 -1.442695, %v338_v38 }
  0xf3   :  { %v2061_v50 = vpop.eup %2060  ;;  %v490_v51 = vadd.f32 1.0, %v2059_v48  ;;  %2076 = vpow2.f32 %v1538_v40  ;;  %v1540_v52 = vmul.f32 -1.442695, %v273_v46  ;;  %v1787_v53 = vpop.f32.mrb[10].mxu0  ;;  %v1557_v45 = vmul.f32 -1.442695, %v358_v4 }
  0xf4   :  { %v489_v54 = vadd.f32 1.0, %v2061_v50  ;;  %2078 = vpow2.f32 %v1541_v49  ;;  %v288_v55 = vadd.f32 %v1787_v53, %v2675_v1  ;;  %v282_v56 = vpop.f32.mrb[11].mxu0  ;;  %v2702_v57 = vpop.f32.mrb[10].mxu1  ;;  %v348_v53 = vadd.f32 %v2689_v31, %v2675_v1 }
  0xf5   :  { %2080 = vrcp.f32 %v490_v51  ;;  %v283_v58 = vadd.f32 %v2675_v1, %v282_v56  ;;  %v2706_v60 = vpop.f32.mrb[11].mxu1  ;;  %v353_v31 = vadd.f32 %v2675_v1, %v2699_v47 }
  0xf6   :  { %v2063_v61 = vpop.eup %2062  ;;  %2082 = vrcp.f32 %v489_v54  ;;  %v1543_v62 = vmul.f32 -1.442695, %v288_v55 }
  0xf7   :  { %v2065_v63 = vpop.eup %2064  ;;  %v492_v0 = vadd.f32 1.0, %v2063_v61  ;;  %2084 = vpow2.f32 %v1540_v52  ;;  %v1542_v2 = vmul.f32 -1.442695, %v283_v58  ;;  %v1790_v3 = vpop.f32.mrb[12].mxu0  ;;  %v1556_v47 = vmul.f32 -1.442695, %v353_v31 }
  0xf8   :  { %v2067_v5 = vpop.eup %2066  ;;  %v491_v6 = vadd.f32 1.0, %v2065_v63  ;;  %2086 = vpow2.f32 %v1543_v62  ;;  %v298_v7 = vadd.f32 %v1790_v3, %v2675_v1  ;;  %v292_v8 = vpop.f32.mrb[13].mxu0  ;;  %v343_v62 = vadd.f32 %v2675_v1, %v2692_v34 }
  0xf9   :  { %v2710_v9 = vpop.f32.mrb[12].mxu1  ;;  %v2712_v10 = vpop.eup %2068  ;;  %2088 = vrcp.f32 %v492_v0  ;;  %v293_v12 = vadd.f32 %v2675_v1, %v292_v8  ;;  %v504_v52 = vadd.f32 1.0, %v2067_v5  ;;  %v1555_v0 = vmul.f32 -1.442695, %v348_v53 }
  0xfa   :  { %v2715_v14 = vpop.f32.mrb[13].mxu1  ;;  %v2071_v15 = vpop.eup %2070  ;;  %2090 = vrcp.f32 %v491_v6  ;;  %v1545_v16 = vmul.f32 -1.442695, %v298_v7  ;;  %v503_v56 = vadd.f32 1.0, %v2712_v10  ;;  %v1554_v7 = vmul.f32 -1.442695, %v343_v62 }
  0xfb   :  { %v2073_v17 = vpop.eup %2072  ;;  %2092 = vpow2.f32 %v1542_v2  ;;  %v1544_v18 = vmul.f32 -1.442695, %v293_v12  ;;  %v1793_v19 = vpop.f32.mrb[14].mxu0  ;;  %v494_v27 = vadd.f32 1.0, %v2071_v15  ;;  %v363_v34 = vadd.f32 %v2675_v1, %v2706_v60 }
  0xfc   :  { %v2075_v22 = vpop.eup %2074  ;;  %2094 = vpow2.f32 %v1545_v16  ;;  %v308_v23 = vadd.f32 %v1793_v19, %v2675_v1  ;;  %v302_v24 = vpop.f32.mrb[15].mxu0  ;;  %v373_v15 = vadd.f32 %v2675_v1, %v2715_v14 }
  0xfd   :  { %v2718_v25 = vpop.f32.mrb[14].mxu1  ;;  %v2077_v26 = vpop.eup %2076  ;;  %v303_v28 = vadd.f32 %v2675_v1, %v302_v24  ;;  %1850 = vmatprep.mubr.f32.mxu1 %v2075_v22  ;;  %2096 = vpow2.f32 %v1550_v13  ;;  %v1558_v60 = vmul.f32 -1.442695, %v363_v34 }
  0xfe   :  { %v2721_v29 = vpop.f32.mrb[15].mxu1  ;;  %v2079_v30 = vpop.eup %2078  ;;  %v493_v32 = vadd.f32 1.0, %v2077_v26  ;;  %2098 = vpow2.f32 %v1544_v18  ;;  %v1547_v33 = vmul.f32 -1.442695, %v308_v23  ;;  %1851 = vmatmul.mubr.f32.vlgmr.msra.gmra.mrb[16].mxu1 %v2073_v17  ;;  %v368_v17 = vadd.f32 %v2702_v57, %v2675_v1 }
  0xff   :  { %v2081_v36 = vpop.eup %2080  ;;  %v1546_v37 = vmul.f32 -1.442695, %v303_v28  ;;  %2100 = vpow2.f32 %v1552_v20  ;;  %v496_v41 = vadd.f32 1.0, %v2079_v30  ;;  %v1560_v23 = vmul.f32 -1.442695, %v373_v15 }
 0x100   :  { %v2083_v39 = vpop.eup %2082  ;;  %2102 = vrcp.f32 %v493_v32  ;;  %v383_v14 = vadd.f32 %v2675_v1, %v2721_v29  ;;  %v1559_v26 = vmul.f32 -1.442695, %v368_v17  ;;  %v378_v57 = vadd.f32 %v2710_v9, %v2675_v1 }
 0x101   :  { %v2085_v40 = vpop.eup %2084  ;;  %2104 = vrcp.f32 %v494_v27  ;;  %1853 = vmatprep.mubr.f32.mxu1 %v2083_v39 }
 0x102   :  { %v2087_v42 = vpop.eup %2086  ;;  %v495_v43 = vadd.f32 1.0, %v2085_v40  ;;  %2106 = vpow2.f32 %v1547_v33  ;;  %1854 = vmatmul.mubr.f32.gmra.mrb[18].mxu1 %v2081_v36  ;;  %v388_v33 = vadd.f32 %v2718_v25, %v2675_v1  ;;  %v1562_v35 = vmul.f32 -1.442695, %v383_v14  ;;  %v1035_v14 = vld [vmem:[%s2963_s5 + $0x60] sm:$0xff] }
 0x103   :  { %v2089_v46 = vpop.eup %2088  ;;  %2108 = vpow2.f32 %v1546_v37  ;;  %v498_v21 = vadd.f32 1.0, %v2087_v42  ;;  %v1561_v36 = vmul.f32 -1.442695, %v378_v57  ;;  %v1037_v57 = vld [vmem:[%s2963_s5 + $0x70] sm:$0xff] }
 0x104   :  { %v2091_v48 = vpop.eup %2090  ;;  %2110 = vrcp.f32 %v495_v43  ;;  %v1563_v40 = vmul.f32 -1.442695, %v388_v33 }
 0x105   :  { %v2093_v49 = vpop.eup %2092  ;;  %2112 = vrcp.f32 %v496_v41  ;;  %1856 = vmatprep.mubr.f32.mxu1 %v2091_v48 }
 0x106   :  { %v2095_v50 = vpop.eup %2094  ;;  %v497_v51 = vadd.f32 1.0, %v2093_v49  ;;  %2114 = vpow2.f32 %v1551_v44  ;;  %1857 = vmatmul.mubr.f32.gmra.mrb[20].mxu1 %v2089_v46 }
 0x107   :  { %v2097_v54 = vpop.eup %2096  ;;  %2116 = vpow2.f32 %v1553_v11  ;;  %v500_v59 = vadd.f32 1.0, %v2095_v50 }
 0x108   :  { %v2099_v55 = vpop.eup %2098  ;;  %2118 = vrcp.f32 %v497_v51  ;;  %v505_v12 = vadd.f32 1.0, %v2097_v54 }
 0x109   :  { %v2101_v58 = vpop.eup %2100  ;;  %2120 = vrcp.f32 %v498_v21  ;;  %v499_v61 = vadd.f32 1.0, %v2099_v55 }
 0x10a   :  { %v2103_v63 = vpop.eup %2102  ;;  %2122 = vrcp.f32 %v504_v52  ;;  %v507_v20 = vadd.f32 1.0, %v2101_v58 }
 0x10b   :  { %v2105_v2 = vpop.eup %2104  ;;  %2124 = vrcp.f32 %v499_v61  ;;  %1859 = vmatprep.mubr.f32.mxu1 %v2103_v63 }
 0x10c   :  { %v2107_v3 = vpop.eup %2106  ;;  %2126 = vrcp.f32 %v503_v56  ;;  %1860 = vmatmul.mubr.f32.gmra.mrb[22].mxu1 %v2105_v2 }
 0x10d   :  { %v2109_v5 = vpop.eup %2108  ;;  %2128 = vrcp.f32 %v500_v59  ;;  %v502_v6 = vadd.f32 1.0, %v2107_v3 }
 0x10e   :  { %v2111_v8 = vpop.eup %2110  ;;  %v501_v10 = vadd.f32 1.0, %v2109_v5  ;;  %2130 = vpow2.f32 %v1555_v0 }
 0x10f   :  { %v2113_v13 = vpop.eup %2112  ;;  %2132 = vrcp.f32 %v502_v6  ;;  %1862 = vmatprep.mubr.f32.mxu1 %v2111_v8  ;;  %v1025_v8 = vld [vmem:[%s2963_s5 + $0x10] sm:$0xff] }
 0x110   :  { %v2115_v16 = vpop.eup %2114  ;;  %2134 = vrcp.f32 %v501_v10  ;;  %1863 = vmatmul.mubr.f32.gmra.mrb[24].mxu1 %v2113_v13  ;;  %v1026_v10 = vld [vmem:[%s2963_s5 + $0x18] sm:$0xff]  ;;  %v1027_v13 = vld [vmem:[%s2963_s5 + $0x20] sm:$0xff] }
 0x111   :  { %v2117_v18 = vpop.eup %2116  ;;  %2136 = vpow2.f32 %v1554_v7  ;;  %v506_v28 = vadd.f32 1.0, %v2115_v16  ;;  %v1029_v16 = vld [vmem:[%s2963_s5 + $0x30] sm:$0xff] }
 0x112   :  { %v2119_v19 = vpop.eup %2118  ;;  %2138 = vrcp.f32 %v505_v12  ;;  %v508_v38 = vadd.f32 1.0, %v2117_v18  ;;  %v2022_v12 = vpack.c.bf16 %v1026_v10, %v1025_v8  ;;  %v1031_v18 = vld [vmem:[%s2963_s5 + $0x40] sm:$0xff] }
 0x113   :  { %v2121_v22 = vpop.eup %2120  ;;  %2140 = vpow2.f32 %v1556_v47  ;;  %1865 = vmatprep.mubr.f32.mxu1 %v2119_v19  ;;  %v1028_v47 = vld [vmem:[%s2963_s5 + $0x28] sm:$0xff] }
 0x114   :  { %v2123_v24 = vpop.eup %2122  ;;  %2142 = vpow2.f32 %v1557_v45  ;;  %1866 = vmatmul.mubr.f32.gmra.mrb[26].mxu1 %v2121_v22  ;;  %2023 = vmatprep.subr.bf16.mxu0 %v2022_v12  ;;  %v2026_v15 = vpack.c.bf16 %v1028_v47, %v1027_v13  ;;  %v1030_v45 = vld [vmem:[%s2963_s5 + $0x38] sm:$0xff] }
 0x115   :  { %v2125_v27 = vpop.eup %2124  ;;  %2144 = vpow2.f32 %v1558_v60  ;;  %2025 = vmatpush3.bf16.msra.mxu0 %v2022_v12  ;;  %v2030_v17 = vpack.c.bf16 %v1030_v45, %v1029_v16  ;;  %v1032_v60 = vld [vmem:[%s2963_s5 + $0x48] sm:$0xff]  ;;  %v1034_v22 = vld [vmem:[%s2963_s5 + $0x58] sm:$0xff] }
 0x116   :  { %v2127_v30 = vpop.eup %2126  ;;  %2146 = vrcp.f32 %v507_v20  ;;  %1868 = vmatprep.mubr.f32.mxu1 %v2125_v27  ;;  %2027 = vmatprep.subr.bf16.mxu0 %v2026_v15  ;;  %v2034_v19 = vpack.c.bf16 %v1032_v60, %v1031_v18  ;;  %v1033_v20 = vld [vmem:[%s2963_s5 + $0x50] sm:$0xff]  ;;  %v1038_v27 = vld [vmem:[%s2963_s5 + $0x78] sm:$0xff] }
 0x117   :  { %v2129_v32 = vpop.eup %2128  ;;  %2148 = vpow2.f32 %v1560_v23  ;;  %v2038_v23 = vpack.c.bf16 %v1034_v22, %v1033_v20 }
 0x118   :  { %v2131_v29 = vpop.eup %2130  ;;  %2150 = vpow2.f32 %v1559_v26  ;;  %1869 = vmatmul.mubr.f32.gmra.mrb[28].mxu1 %v2129_v32 }
 0x119   :  { %v2133_v37 = vpop.eup %2132  ;;  %2152 = vrcp.f32 %v506_v28  ;;  %v510_v1 = vadd.f32 1.0, %v2131_v29  ;;  %2029 = vmatpush3.bf16.msra.mxu0 %v2026_v15  ;;  %v2046_v28 = vpack.c.bf16 %v1038_v27, %v1037_v57 }
 0x11a   :  { %v2135_v9 = vpop.eup %2134  ;;  %2154 = vpow2.f32 %v1562_v35  ;;  %2031 = vmatprep.subr.bf16.mxu0 %v2030_v17 }
 0x11b   :  { %v2137_v39 = vpop.eup %2136  ;;  %1871 = vmatprep.mubr.f32.mxu1 %v2135_v9  ;;  %2156 = vpow2.f32 %v1561_v36 }
 0x11c   :  { %v2139_v41 = vpop.eup %2138  ;;  %v509_v42 = vadd.f32 1.0, %v2137_v39  ;;  %1872 = vmatmul.mubr.f32.gmra.mrb[30].mxu1 %v2133_v37  ;;  %2158 = vrcp.f32 %v508_v38 }
 0x11d   :  { %v2141_v43 = vpop.eup %2140  ;;  %1874 = vmatprep.mubr.f32.mxu1 %v2127_v30  ;;  %2033 = vmatpush3.bf16.msra.mxu0 %v2030_v17  ;;  %v2793_v30 = vld [vmem:[%s2965_s4] ss:$0 sm:$0xff] }
 0x11e   :  { %v2143_v25 = vpop.eup %2142  ;;  %2160 = vrcp.f32 %v509_v42  ;;  %v511_v44 = vadd.f32 1.0, %v2141_v43  ;;  %2035 = vmatprep.subr.bf16.mxu0 %v2034_v19 }
 0x11f   :  { %v2145_v46 = vpop.eup %2144  ;;  %2162 = vpow2.f32 %v1563_v40  ;;  %v512_v21 = vadd.f32 1.0, %v2143_v25 }
 0x120   :  { %v2147_v11 = vpop.eup %2146  ;;  %2164 = vrcp.f32 %v511_v44  ;;  %v513_v48 = vadd.f32 1.0, %v2145_v46  ;;  %1875 = vmatmul.mubr.f32.gmra.mrb[32].mxu1 %v2123_v24  ;;  %v1036_v24 = vld [vmem:[%s2963_s5 + $0x68] sm:$0xff] }
 0x121   :  { %v2149_v49 = vpop.eup %2148  ;;  %2166 = vrcp.f32 %v510_v1  ;;  %1877 = vmatprep.mubr.f32.mxu1 %v2139_v41  ;;  %2037 = vmatpush3.bf16.msra.mxu0 %v2034_v19  ;;  %v2042_v26 = vpack.c.bf16 %v1036_v24, %v1035_v14 }
 0x122   :  { %v2151_v50 = vpop.eup %2150  ;;  %2168 = vrcp.f32 %v513_v48  ;;  %v515_v52 = vadd.f32 1.0, %v2149_v49  ;;  %2039 = vmatprep.subr.bf16.mxu0 %v2038_v23 }
 0x123   :  { %v2153_v51 = vpop.eup %2152  ;;  %2170 = vrcp.f32 %v512_v21  ;;  %v514_v54 = vadd.f32 1.0, %v2151_v50 }
 0x124   :  { %1878 = vmatmul.mubr.f32.gmra.mrb[34].mxu1 %v2153_v51  ;;  %v2155_v53 = vpop.eup %2154  ;;  %2172 = vrcp.f32 %v515_v52 }
 0x125   :  { %1880 = vmatprep.mubr.f32.mxu1 %v2147_v11  ;;  %v2157_v55 = vpop.eup %2156  ;;  %v517_v59 = vadd.f32 1.0, %v2155_v53  ;;  %2174 = vrcp.f32 %v514_v54  ;;  %2041 = vmatpush3.bf16.msra.mxu0 %v2038_v23 }
 0x126   :  { %v2159_v56 = vpop.eup %2158  ;;  %v516_v62 = vadd.f32 1.0, %v2157_v55  ;;  %2043 = vmatprep.subr.bf16.mxu0 %v2042_v26 }
 0x127   :  { %2176 = vrcp.f32 %v517_v59 }
 0x128   :  { %v2161_v58 = vpop.eup %2160  ;;  %1881 = vmatmul.mubr.f32.gmra.mrb[36].mxu1 %v2159_v56  ;;  %2178 = vrcp.f32 %v516_v62 }
 0x129   :  { %v2163_v61 = vpop.eup %2162  ;;  %1883 = vmatprep.mubr.f32.mxu1 %v2161_v58  ;;  %2045 = vmatpush3.bf16.msra.mxu0 %v2042_v26 }
 0x12a   :  { %v2165_v63 = vpop.eup %2164  ;;  %v518_v2 = vadd.f32 1.0, %v2163_v61  ;;  %2047 = vmatprep.subr.bf16.mxu0 %v2046_v28 }
 0x12b   :  { %v2167_v0 = vpop.eup %2166 }
 0x12c   :  { %1884 = vmatmul.mubr.f32.gmra.mrb[38].mxu1 %v2167_v0  ;;  %v2169_v31 = vpop.eup %2168  ;;  %2180 = vrcp.f32 %v518_v2 }
 0x12d   :  { %1886 = vmatprep.mubr.f32.mxu1 %v2165_v63  ;;  %v2171_v3 = vpop.eup %2170  ;;  %2049 = vmatpush3.bf16.msra.mxu0 %v2046_v28 }
 0x12e   :  { %v2173_v4 = vpop.eup %2172 }
 0x12f   :  { %v2175_v5 = vpop.eup %2174 }
 0x130   :  { %1887 = vmatmul.mubr.f32.gmra.mrb[40].mxu1 %v2171_v3 }
 0x131   :  { %1889 = vmatprep.mubr.f32.mxu1 %v2169_v31  ;;  %v2177_v6 = vpop.eup %2176 }
 0x132   :  { %v2179_v7 = vpop.eup %2178 }
 0x134   :  { %1890 = vmatmul.mubr.f32.gmra.mrb[42].mxu1 %v2175_v5 }
 0x135   :  { %1892 = vmatprep.mubr.f32.mxu1 %v2173_v4 }
 0x136   :  { %v2181_v34 = vpop.eup %2180 }
 0x138   :  { %1893 = vmatmul.mubr.f32.gmra.mrb[44].mxu1 %v2179_v7 }
 0x139   :  { %1895 = vmatprep.mubr.f32.mxu1 %v2177_v6 }
 0x13c   :  { %1896 = vmatmul.mubr.f32.gmra.mrb[46].mxu1 %v2181_v34 }
 0x1d1   :  { %v1852_v32 = vpop.f32.mrb[16].mxu1 }
 0x1d2   :  { %v678_v33 = vadd.f32 %v1852_v32, %v2793_v30  ;;  %v672_v35 = vpop.f32.mrb[17].mxu1 }
 0x1d3   :  { %v673_v29 = vadd.f32 %v2793_v30, %v672_v35 }
 0x1d4   :  { %v1566_v36 = vmul.f32 -1.442695, %v678_v33 }
 0x1d5   :  { %v1565_v37 = vmul.f32 -1.442695, %v673_v29  ;;  %v1855_v38 = vpop.f32.mrb[18].mxu1 }
 0x1d6   :  { %2182 = vpow2.f32 %v1566_v36  ;;  %v688_v9 = vadd.f32 %v1855_v38, %v2793_v30  ;;  %v682_v39 = vpop.f32.mrb[19].mxu1 }
 0x1d7   :  { %2184 = vpow2.f32 %v1565_v37  ;;  %v683_v40 = vadd.f32 %v2793_v30, %v682_v39 }
 0x1d8   :  { %v1568_v41 = vmul.f32 -1.442695, %v688_v9 }
 0x1d9   :  { %v1567_v42 = vmul.f32 -1.442695, %v683_v40  ;;  %v1858_v43 = vpop.f32.mrb[20].mxu1 }
 0x1da   :  { %2186 = vpow2.f32 %v1568_v41  ;;  %v698_v1 = vadd.f32 %v1858_v43, %v2793_v30  ;;  %v692_v25 = vpop.f32.mrb[21].mxu1 }
 0x1db   :  { %2188 = vpow2.f32 %v1567_v42  ;;  %v693_v44 = vadd.f32 %v2793_v30, %v692_v25 }
 0x1dc   :  { %v1570_v46 = vmul.f32 -1.442695, %v698_v1 }
 0x1dd   :  { %v1569_v11 = vmul.f32 -1.442695, %v693_v44 }
 0x1de   :  { %2190 = vpow2.f32 %v1570_v46 }
 0x1df   :  { %2192 = vpow2.f32 %v1569_v11  ;;  %v1861_v48 = vpop.f32.mrb[22].mxu1 }
 0x1e0   :  { %v2183_v49 = vpop.eup %2182  ;;  %v708_v21 = vadd.f32 %v1861_v48, %v2793_v30  ;;  %v702_v50 = vpop.f32.mrb[23].mxu1 }
 0x1e1   :  { %v2185_v51 = vpop.eup %2184  ;;  %v928_v52 = vadd.f32 1.0, %v2183_v49  ;;  %v703_v53 = vadd.f32 %v2793_v30, %v702_v50 }
 0x1e2   :  { %v927_v54 = vadd.f32 1.0, %v2185_v51  ;;  %v1572_v55 = vmul.f32 -1.442695, %v708_v21 }
 0x1e3   :  { %2194 = vrcp.f32 %v928_v52  ;;  %v1571_v56 = vmul.f32 -1.442695, %v703_v53  ;;  %v1864_v58 = vpop.f32.mrb[24].mxu1 }
 0x1e4   :  { %v2187_v59 = vpop.eup %2186  ;;  %2196 = vrcp.f32 %v927_v54  ;;  %v718_v61 = vadd.f32 %v1864_v58, %v2793_v30  ;;  %v712_v62 = vpop.f32.mrb[25].mxu1 }
 0x1e5   :  { %v2189_v63 = vpop.eup %2188  ;;  %v930_v0 = vadd.f32 1.0, %v2187_v59  ;;  %2198 = vpow2.f32 %v1572_v55  ;;  %v713_v2 = vadd.f32 %v2793_v30, %v712_v62 }
 0x1e6   :  { %v929_v31 = vadd.f32 1.0, %v2189_v63  ;;  %2200 = vpow2.f32 %v1571_v56  ;;  %v1574_v3 = vmul.f32 -1.442695, %v718_v61 }
 0x1e7   :  { %2202 = vrcp.f32 %v930_v0  ;;  %v1573_v4 = vmul.f32 -1.442695, %v713_v2  ;;  %v1867_v5 = vpop.f32.mrb[26].mxu1 }
 0x1e8   :  { %v2191_v6 = vpop.eup %2190  ;;  %2204 = vrcp.f32 %v929_v31  ;;  %v728_v7 = vadd.f32 %v1867_v5, %v2793_v30  ;;  %v722_v34 = vpop.f32.mrb[27].mxu1 }
 0x1e9   :  { %v2193_v8 = vpop.eup %2192  ;;  %v932_v10 = vadd.f32 1.0, %v2191_v6  ;;  %2206 = vpow2.f32 %v1574_v3  ;;  %v723_v12 = vadd.f32 %v2793_v30, %v722_v34 }
 0x1ea   :  { %v931_v13 = vadd.f32 1.0, %v2193_v8  ;;  %2208 = vpow2.f32 %v1573_v4  ;;  %v1576_v47 = vmul.f32 -1.442695, %v728_v7 }
 0x1eb   :  { %2210 = vrcp.f32 %v932_v10  ;;  %v1575_v15 = vmul.f32 -1.442695, %v723_v12  ;;  %v1870_v16 = vpop.f32.mrb[28].mxu1 }
 0x1ec   :  { %2212 = vrcp.f32 %v931_v13  ;;  %v738_v45 = vadd.f32 %v1870_v16, %v2793_v30  ;;  %v732_v17 = vpop.f32.mrb[29].mxu1 }
 0x1ed   :  { %v2195_v18 = vpop.eup %2194  ;;  %2214 = vpow2.f32 %v1576_v47  ;;  %v733_v60 = vadd.f32 %v2793_v30, %v732_v17 }
 0x1ee   :  { %v2197_v19 = vpop.eup %2196  ;;  %2216 = vpow2.f32 %v1575_v15  ;;  %v1578_v20 = vmul.f32 -1.442695, %v738_v45 }
 0x1ef   :  { %v2199_v22 = vpop.eup %2198  ;;  %v1577_v23 = vmul.f32 -1.442695, %v733_v60  ;;  %v1873_v14 = vpop.f32.mrb[30].mxu1  ;;  %1930 = vmatprep.mubr.f32.mxu0 %v2197_v19 }
 0x1f0   :  { %v2201_v24 = vpop.eup %2200  ;;  %v934_v26 = vadd.f32 1.0, %v2199_v22  ;;  %2218 = vpow2.f32 %v1578_v20  ;;  %v748_v57 = vadd.f32 %v1873_v14, %v2793_v30  ;;  %v742_v27 = vpop.f32.mrb[31].mxu1  ;;  %1931 = vmatmul.mubr.f32.vlgmr.msra.gmra.mrb[16].mxu0 %v2195_v18 }
 0x1f1   :  { %v2203_v28 = vpop.eup %2202  ;;  %v933_v32 = vadd.f32 1.0, %v2201_v24  ;;  %2220 = vpow2.f32 %v1577_v23  ;;  %v743_v33 = vadd.f32 %v2793_v30, %v742_v27 }
 0x1f2   :  { %v2205_v35 = vpop.eup %2204  ;;  %2222 = vrcp.f32 %v934_v26  ;;  %v1580_v29 = vmul.f32 -1.442695, %v748_v57 }
 0x1f3   :  { %v2207_v36 = vpop.eup %2206  ;;  %2224 = vrcp.f32 %v933_v32  ;;  %v1579_v37 = vmul.f32 -1.442695, %v743_v33  ;;  %v1876_v38 = vpop.f32.mrb[32].mxu1  ;;  %1933 = vmatprep.mubr.f32.mxu0 %v2205_v35 }
 0x1f4   :  { %v2209_v9 = vpop.eup %2208  ;;  %v936_v39 = vadd.f32 1.0, %v2207_v36  ;;  %2226 = vpow2.f32 %v1580_v29  ;;  %v758_v40 = vadd.f32 %v1876_v38, %v2793_v30  ;;  %v752_v41 = vpop.f32.mrb[33].mxu1  ;;  %1934 = vmatmul.mubr.f32.gmra.mrb[18].mxu0 %v2203_v28 }
 0x1f5   :  { %v2211_v42 = vpop.eup %2210  ;;  %v935_v43 = vadd.f32 1.0, %v2209_v9  ;;  %2228 = vpow2.f32 %v1579_v37  ;;  %v753_v1 = vadd.f32 %v2793_v30, %v752_v41 }
 0x1f6   :  { %v2213_v25 = vpop.eup %2212  ;;  %2230 = vrcp.f32 %v936_v39  ;;  %v1582_v44 = vmul.f32 -1.442695, %v758_v40 }
 0x1f7   :  { %v2215_v46 = vpop.eup %2214  ;;  %2232 = vrcp.f32 %v935_v43  ;;  %v1581_v11 = vmul.f32 -1.442695, %v753_v1  ;;  %v1879_v48 = vpop.f32.mrb[34].mxu1  ;;  %1936 = vmatprep.mubr.f32.mxu0 %v2213_v25 }
 0x1f8   :  { %v2217_v49 = vpop.eup %2216  ;;  %v938_v21 = vadd.f32 1.0, %v2215_v46  ;;  %2234 = vpow2.f32 %v1582_v44  ;;  %v768_v50 = vadd.f32 %v1879_v48, %v2793_v30  ;;  %v762_v51 = vpop.f32.mrb[35].mxu1  ;;  %1937 = vmatmul.mubr.f32.gmra.mrb[20].mxu0 %v2211_v42 }
 0x1f9   :  { %v937_v52 = vadd.f32 1.0, %v2217_v49  ;;  %2236 = vpow2.f32 %v1581_v11  ;;  %v763_v53 = vadd.f32 %v2793_v30, %v762_v51 }
 0x1fa   :  { %v2219_v54 = vpop.eup %2218  ;;  %2238 = vrcp.f32 %v938_v21  ;;  %v1584_v55 = vmul.f32 -1.442695, %v768_v50 }
 0x1fb   :  { %v2221_v56 = vpop.eup %2220  ;;  %2240 = vrcp.f32 %v937_v52  ;;  %v940_v58 = vadd.f32 1.0, %v2219_v54  ;;  %v1583_v59 = vmul.f32 -1.442695, %v763_v53  ;;  %v1882_v61 = vpop.f32.mrb[36].mxu1 }
 0x1fc   :  { %v2223_v62 = vpop.eup %2222  ;;  %v939_v63 = vadd.f32 1.0, %v2221_v56  ;;  %2242 = vpow2.f32 %v1584_v55  ;;  %v778_v0 = vadd.f32 %v1882_v61, %v2793_v30  ;;  %v772_v2 = vpop.f32.mrb[37].mxu1 }
 0x1fd   :  { %v2225_v31 = vpop.eup %2224  ;;  %2244 = vrcp.f32 %v940_v58  ;;  %v773_v3 = vadd.f32 %v2793_v30, %v772_v2 }
 0x1fe   :  { %v2227_v4 = vpop.eup %2226  ;;  %2246 = vrcp.f32 %v939_v63  ;;  %v1586_v5 = vmul.f32 -1.442695, %v778_v0  ;;  %1939 = vmatprep.mubr.f32.mxu0 %v2225_v31 }
 0x1ff   :  { %v2229_v6 = vpop.eup %2228  ;;  %v942_v7 = vadd.f32 1.0, %v2227_v4  ;;  %2248 = vpow2.f32 %v1583_v59  ;;  %v1585_v34 = vmul.f32 -1.442695, %v773_v3  ;;  %1940 = vmatmul.mubr.f32.gmra.mrb[22].mxu0 %v2223_v62  ;;  %v1885_v8 = vpop.f32.mrb[38].mxu1 }
 0x200   :  { %v2231_v10 = vpop.eup %2230  ;;  %v941_v12 = vadd.f32 1.0, %v2229_v6  ;;  %2250 = vpow2.f32 %v1586_v5  ;;  %v788_v13 = vadd.f32 %v1885_v8, %v2793_v30  ;;  %v782_v47 = vpop.f32.mrb[39].mxu1 }
 0x201   :  { %v2233_v15 = vpop.eup %2232  ;;  %2252 = vrcp.f32 %v942_v7  ;;  %v783_v16 = vadd.f32 %v2793_v30, %v782_v47 }
 0x202   :  { %v2235_v45 = vpop.eup %2234  ;;  %2254 = vrcp.f32 %v941_v12  ;;  %v1588_v17 = vmul.f32 -1.442695, %v788_v13  ;;  %1942 = vmatprep.mubr.f32.mxu0 %v2233_v15 }
 0x203   :  { %v2237_v18 = vpop.eup %2236  ;;  %v944_v60 = vadd.f32 1.0, %v2235_v45  ;;  %2256 = vpow2.f32 %v1585_v34  ;;  %v1587_v19 = vmul.f32 -1.442695, %v783_v16  ;;  %1943 = vmatmul.mubr.f32.gmra.mrb[24].mxu0 %v2231_v10  ;;  %v1888_v20 = vpop.f32.mrb[40].mxu1 }
 0x204   :  { %v2239_v22 = vpop.eup %2238  ;;  %v943_v23 = vadd.f32 1.0, %v2237_v18  ;;  %2258 = vpow2.f32 %v1588_v17  ;;  %v798_v14 = vadd.f32 %v1888_v20, %v2793_v30  ;;  %v792_v24 = vpop.f32.mrb[41].mxu1 }
 0x205   :  { %v2241_v26 = vpop.eup %2240  ;;  %2260 = vrcp.f32 %v944_v60  ;;  %v793_v57 = vadd.f32 %v2793_v30, %v792_v24 }
 0x206   :  { %v2243_v27 = vpop.eup %2242  ;;  %2262 = vrcp.f32 %v943_v23  ;;  %v1590_v28 = vmul.f32 -1.442695, %v798_v14  ;;  %1945 = vmatprep.mubr.f32.mxu0 %v2241_v26 }
 0x207   :  { %v2245_v32 = vpop.eup %2244  ;;  %2264 = vpow2.f32 %v1587_v19  ;;  %v1589_v33 = vmul.f32 -1.442695, %v793_v57  ;;  %1946 = vmatmul.mubr.f32.gmra.mrb[26].mxu0 %v2239_v22  ;;  %v1891_v35 = vpop.f32.mrb[42].mxu1  ;;  %v946_v9 = vadd.f32 1.0, %v2243_v27 }
 0x208   :  { %v2247_v29 = vpop.eup %2246  ;;  %2266 = vpow2.f32 %v1590_v28  ;;  %v808_v36 = vadd.f32 %v1891_v35, %v2793_v30  ;;  %v802_v37 = vpop.f32.mrb[43].mxu1  ;;  %v2830_v35 = vld [vmem:[%s2966_s6] ss:$0 sm:$0xff] }
 0x209   :  { %v2249_v38 = vpop.eup %2248  ;;  %v803_v39 = vadd.f32 %v2793_v30, %v802_v37  ;;  %1948 = vmatprep.mubr.f32.mxu0 %v2247_v29  ;;  %2268 = vpow2.f32 %v1589_v33 }
 0x20a   :  { %v2251_v40 = vpop.eup %2250  ;;  %v945_v41 = vadd.f32 1.0, %v2249_v38  ;;  %v1592_v42 = vmul.f32 -1.442695, %v808_v36 }
 0x20b   :  { %v2253_v43 = vpop.eup %2252  ;;  %v1591_v1 = vmul.f32 -1.442695, %v803_v39  ;;  %1949 = vmatmul.mubr.f32.gmra.mrb[28].mxu0 %v2245_v32  ;;  %v1894_v25 = vpop.f32.mrb[44].mxu1  ;;  %v948_v49 = vadd.f32 1.0, %v2251_v40 }
 0x20c   :  { %v2255_v44 = vpop.eup %2254  ;;  %2270 = vrcp.f32 %v945_v41  ;;  %v818_v46 = vadd.f32 %v1894_v25, %v2793_v30  ;;  %v812_v11 = vpop.f32.mrb[45].mxu1 }
 0x20d   :  { %v2257_v48 = vpop.eup %2256  ;;  %2272 = vrcp.f32 %v946_v9  ;;  %v813_v21 = vadd.f32 %v2793_v30, %v812_v11  ;;  %1951 = vmatprep.mubr.f32.mxu0 %v2255_v44 }
 0x20e   :  { %v2259_v50 = vpop.eup %2258  ;;  %v947_v51 = vadd.f32 1.0, %v2257_v48  ;;  %2274 = vpow2.f32 %v1592_v42  ;;  %v1594_v52 = vmul.f32 -1.442695, %v818_v46 }
 0x20f   :  { %v2261_v53 = vpop.eup %2260  ;;  %2276 = vpow2.f32 %v1591_v1  ;;  %v1593_v54 = vmul.f32 -1.442695, %v813_v21  ;;  %1952 = vmatmul.mubr.f32.gmra.mrb[30].mxu0 %v2253_v43  ;;  %v1897_v55 = vpop.f32.mrb[46].mxu1  ;;  %v950_v62 = vadd.f32 1.0, %v2259_v50 }
 0x210   :  { %v2263_v56 = vpop.eup %2262  ;;  %2278 = vrcp.f32 %v947_v51  ;;  %v828_v58 = vadd.f32 %v1897_v55, %v2793_v30  ;;  %v822_v59 = vpop.f32.mrb[47].mxu1 }
 0x211   :  { %v2265_v61 = vpop.eup %2264  ;;  %2280 = vrcp.f32 %v948_v49  ;;  %v823_v63 = vadd.f32 %v2793_v30, %v822_v59  ;;  %1954 = vmatprep.mubr.f32.mxu0 %v2263_v56 }
 0x212   :  { %v2267_v0 = vpop.eup %2266  ;;  %v949_v2 = vadd.f32 1.0, %v2265_v61  ;;  %2282 = vpow2.f32 %v1594_v52  ;;  %v1596_v31 = vmul.f32 -1.442695, %v828_v58 }
 0x213   :  { %2284 = vpow2.f32 %v1593_v54  ;;  %1955 = vmatmul.mubr.f32.gmra.mrb[32].mxu0 %v2261_v53  ;;  %v2269_v3 = vpop.eup %2268  ;;  %v1595_v4 = vmul.f32 -1.442695, %v823_v63  ;;  %v952_v5 = vadd.f32 1.0, %v2267_v0 }
 0x214   :  { %2286 = vrcp.f32 %v949_v2  ;;  %v951_v6 = vadd.f32 1.0, %v2269_v3 }
 0x215   :  { %2288 = vrcp.f32 %v950_v62 }
 0x216   :  { %v2271_v7 = vpop.eup %2270  ;;  %2290 = vpow2.f32 %v1596_v31 }
 0x217   :  { %v2273_v34 = vpop.eup %2272  ;;  %2292 = vrcp.f32 %v951_v6  ;;  %1957 = vmatprep.mubr.f32.mxu0 %v2271_v7 }
 0x218   :  { %v2275_v8 = vpop.eup %2274  ;;  %2294 = vpow2.f32 %v1595_v4  ;;  %1958 = vmatmul.mubr.f32.gmra.mrb[34].mxu0 %v2273_v34 }
 0x219   :  { %v2277_v30 = vpop.eup %2276  ;;  %2296 = vrcp.f32 %v952_v5  ;;  %v954_v10 = vadd.f32 1.0, %v2275_v8 }
 0x21a   :  { %v2279_v12 = vpop.eup %2278  ;;  %v953_v13 = vadd.f32 1.0, %v2277_v30 }
 0x21b   :  { %v2281_v47 = vpop.eup %2280  ;;  %1960 = vmatprep.mubr.f32.mxu0 %v2279_v12 }
 0x21c   :  { %v2283_v15 = vpop.eup %2282  ;;  %2298 = vrcp.f32 %v953_v13  ;;  %1961 = vmatmul.mubr.f32.gmra.mrb[36].mxu0 %v2281_v47 }
 0x21d   :  { %v2285_v16 = vpop.eup %2284  ;;  %2300 = vrcp.f32 %v954_v10  ;;  %v956_v45 = vadd.f32 1.0, %v2283_v15 }
 0x21e   :  { %v2287_v17 = vpop.eup %2286  ;;  %v955_v18 = vadd.f32 1.0, %v2285_v16 }
 0x21f   :  { %v2289_v60 = vpop.eup %2288  ;;  %1963 = vmatprep.mubr.f32.mxu0 %v2287_v17 }
 0x220   :  { %v2291_v19 = vpop.eup %2290  ;;  %2302 = vrcp.f32 %v955_v18  ;;  %1964 = vmatmul.mubr.f32.gmra.mrb[38].mxu0 %v2289_v60 }
 0x221   :  { %v2293_v20 = vpop.eup %2292  ;;  %2304 = vrcp.f32 %v956_v45  ;;  %v958_v23 = vadd.f32 1.0, %v2291_v19 }
 0x222   :  { %v2295_v22 = vpop.eup %2294  ;;  %1966 = vmatprep.mubr.f32.mxu0 %v2293_v20 }
 0x223   :  { %v2297_v14 = vpop.eup %2296  ;;  %v957_v24 = vadd.f32 1.0, %v2295_v22 }
 0x224   :  { %1967 = vmatmul.mubr.f32.gmra.mrb[40].mxu0 %v2297_v14 }
 0x225   :  { %2306 = vrcp.f32 %v957_v24 }
 0x226   :  { %v2299_v26 = vpop.eup %2298  ;;  %2308 = vrcp.f32 %v958_v23 }
 0x227   :  { %v2301_v57 = vpop.eup %2300  ;;  %1969 = vmatprep.mubr.f32.mxu0 %v2299_v26 }
 0x228   :  { %1970 = vmatmul.mubr.f32.gmra.mrb[42].mxu0 %v2301_v57 }
 0x22a   :  { %v2303_v27 = vpop.eup %2302 }
 0x22b   :  { %v2305_v28 = vpop.eup %2304  ;;  %1972 = vmatprep.mubr.f32.mxu0 %v2303_v27 }
 0x22c   :  { %1973 = vmatmul.mubr.f32.gmra.mrb[44].mxu0 %v2305_v28 }
 0x22f   :  { %v2307_v32 = vpop.eup %2306 }
 0x230   :  { %v2309_v33 = vpop.eup %2308  ;;  %1975 = vmatprep.mubr.f32.mxu0 %v2307_v32 }
 0x231   :  { %1976 = vmatmul.mubr.f32.gmra.mrb[46].mxu0 %v2309_v33 }
 0x2c3   :  { %v1932_v29 = vpop.f32.mrb[16].mxu0 }
 0x2c4   :  { %v1118_v36 = vadd.f32 %v1932_v29, %v2830_v35  ;;  %v1112_v37 = vpop.f32.mrb[17].mxu0 }
 0x2c5   :  { %v1113_v38 = vadd.f32 %v2830_v35, %v1112_v37 }
 0x2c6   :  { %v1599_v9 = vmul.f32 -1.442695, %v1118_v36 }
 0x2c7   :  { %v1598_v39 = vmul.f32 -1.442695, %v1113_v38  ;;  %v1935_v40 = vpop.f32.mrb[18].mxu0 }
 0x2c8   :  { %2310 = vpow2.f32 %v1599_v9  ;;  %v1128_v41 = vadd.f32 %v1935_v40, %v2830_v35  ;;  %v1122_v42 = vpop.f32.mrb[19].mxu0 }
 0x2c9   :  { %2312 = vpow2.f32 %v1598_v39  ;;  %v1123_v43 = vadd.f32 %v2830_v35, %v1122_v42 }
 0x2ca   :  { %v1601_v1 = vmul.f32 -1.442695, %v1128_v41 }
 0x2cb   :  { %v1600_v25 = vmul.f32 -1.442695, %v1123_v43  ;;  %v1938_v44 = vpop.f32.mrb[20].mxu0 }
 0x2cc   :  { %2314 = vpow2.f32 %v1601_v1  ;;  %v1138_v46 = vadd.f32 %v1938_v44, %v2830_v35  ;;  %v1132_v11 = vpop.f32.mrb[21].mxu0 }
 0x2cd   :  { %2316 = vpow2.f32 %v1600_v25  ;;  %v1133_v48 = vadd.f32 %v2830_v35, %v1132_v11 }
 0x2ce   :  { %v1603_v49 = vmul.f32 -1.442695, %v1138_v46 }
 0x2cf   :  { %v1602_v21 = vmul.f32 -1.442695, %v1133_v48 }
 0x2d0   :  { %2318 = vpow2.f32 %v1603_v49 }
 0x2d1   :  { %2320 = vpow2.f32 %v1602_v21 }
 0x2d2   :  { %v2311_v50 = vpop.eup %2310  ;;  %v1941_v51 = vpop.f32.mrb[22].mxu0 }
 0x2d3   :  { %v2313_v52 = vpop.eup %2312  ;;  %v1368_v53 = vadd.f32 1.0, %v2311_v50  ;;  %v1148_v54 = vadd.f32 %v1941_v51, %v2830_v35  ;;  %v1142_v55 = vpop.f32.mrb[23].mxu0 }
 0x2d4   :  { %v1367_v56 = vadd.f32 1.0, %v2313_v52  ;;  %v1143_v58 = vadd.f32 %v2830_v35, %v1142_v55 }
 0x2d5   :  { %2322 = vrcp.f32 %v1368_v53  ;;  %v1605_v59 = vmul.f32 -1.442695, %v1148_v54 }
 0x2d6   :  { %v2315_v61 = vpop.eup %2314  ;;  %2324 = vrcp.f32 %v1367_v56  ;;  %v1604_v62 = vmul.f32 -1.442695, %v1143_v58  ;;  %v1944_v63 = vpop.f32.mrb[24].mxu0 }
 0x2d7   :  { %v2317_v0 = vpop.eup %2316  ;;  %v1370_v2 = vadd.f32 1.0, %v2315_v61  ;;  %2326 = vpow2.f32 %v1605_v59  ;;  %v1158_v31 = vadd.f32 %v1944_v63, %v2830_v35  ;;  %v1152_v3 = vpop.f32.mrb[25].mxu0 }
 0x2d8   :  { %v1369_v4 = vadd.f32 1.0, %v2317_v0  ;;  %2328 = vpow2.f32 %v1604_v62  ;;  %v1153_v5 = vadd.f32 %v2830_v35, %v1152_v3 }
 0x2d9   :  { %2330 = vrcp.f32 %v1370_v2  ;;  %v1607_v6 = vmul.f32 -1.442695, %v1158_v31 }
 0x2da   :  { %v2319_v7 = vpop.eup %2318  ;;  %2332 = vrcp.f32 %v1369_v4  ;;  %v1606_v34 = vmul.f32 -1.442695, %v1153_v5  ;;  %v1947_v8 = vpop.f32.mrb[26].mxu0 }
 0x2db   :  { %v2321_v30 = vpop.eup %2320  ;;  %v1372_v10 = vadd.f32 1.0, %v2319_v7  ;;  %2334 = vpow2.f32 %v1607_v6  ;;  %v1168_v12 = vadd.f32 %v1947_v8, %v2830_v35  ;;  %v1162_v13 = vpop.f32.mrb[27].mxu0 }
 0x2dc   :  { %v1371_v47 = vadd.f32 1.0, %v2321_v30  ;;  %2336 = vpow2.f32 %v1606_v34  ;;  %v1163_v15 = vadd.f32 %v2830_v35, %v1162_v13 }
 0x2dd   :  { %2338 = vrcp.f32 %v1372_v10  ;;  %v1609_v16 = vmul.f32 -1.442695, %v1168_v12 }
 0x2de   :  { %2340 = vrcp.f32 %v1371_v47  ;;  %v1608_v45 = vmul.f32 -1.442695, %v1163_v15  ;;  %v1950_v17 = vpop.f32.mrb[28].mxu0 }
 0x2df   :  { %v2323_v18 = vpop.eup %2322  ;;  %2342 = vpow2.f32 %v1609_v16  ;;  %v1178_v60 = vadd.f32 %v1950_v17, %v2830_v35  ;;  %v1172_v19 = vpop.f32.mrb[29].mxu0 }
 0x2e0   :  { %v2325_v20 = vpop.eup %2324  ;;  %1464 = vst [vmem:[%s2967_s7 + $0x8] sm:$0xff] %v2323_v18  ;;  %2344 = vpow2.f32 %v1608_v45  ;;  %v1173_v22 = vadd.f32 %v2830_v35, %v1172_v19 }
 0x2e1   :  { %v2327_v23 = vpop.eup %2326  ;;  %1463 = vst [vmem:[%s2967_s7] sm:$0xff] %v2325_v20  ;;  %v1611_v14 = vmul.f32 -1.442695, %v1178_v60 }
 0x2e2   :  { %v2329_v24 = vpop.eup %2328  ;;  %v1374_v26 = vadd.f32 1.0, %v2327_v23  ;;  %v1610_v57 = vmul.f32 -1.442695, %v1173_v22  ;;  %v1953_v27 = vpop.f32.mrb[30].mxu0 }
 0x2e3   :  { %v2331_v28 = vpop.eup %2330  ;;  %v1373_v32 = vadd.f32 1.0, %v2329_v24  ;;  %2346 = vpow2.f32 %v1611_v14  ;;  %v1188_v33 = vadd.f32 %v1953_v27, %v2830_v35  ;;  %v1182_v29 = vpop.f32.mrb[31].mxu0 }
 0x2e4   :  { %v2333_v36 = vpop.eup %2332  ;;  %1466 = vst [vmem:[%s2967_s7 + $0x18] sm:$0xff] %v2331_v28  ;;  %2348 = vrcp.f32 %v1374_v26  ;;  %v1183_v37 = vadd.f32 %v2830_v35, %v1182_v29 }
 0x2e5   :  { %v2335_v38 = vpop.eup %2334  ;;  %1465 = vst [vmem:[%s2967_s7 + $0x10] sm:$0xff] %v2333_v36  ;;  %2350 = vrcp.f32 %v1373_v32  ;;  %v1613_v9 = vmul.f32 -1.442695, %v1188_v33 }
 0x2e6   :  { %v2337_v39 = vpop.eup %2336  ;;  %v1376_v40 = vadd.f32 1.0, %v2335_v38  ;;  %2352 = vpow2.f32 %v1610_v57  ;;  %v1612_v41 = vmul.f32 -1.442695, %v1183_v37  ;;  %v1956_v42 = vpop.f32.mrb[32].mxu0 }
 0x2e7   :  { %v2339_v43 = vpop.eup %2338  ;;  %v1375_v1 = vadd.f32 1.0, %v2337_v39  ;;  %2354 = vpow2.f32 %v1613_v9  ;;  %v1198_v25 = vadd.f32 %v1956_v42, %v2830_v35  ;;  %v1192_v44 = vpop.f32.mrb[33].mxu0 }
 0x2e8   :  { %v2341_v46 = vpop.eup %2340  ;;  %1468 = vst [vmem:[%s2967_s7 + $0x28] sm:$0xff] %v2339_v43  ;;  %2356 = vrcp.f32 %v1376_v40  ;;  %v1193_v11 = vadd.f32 %v2830_v35, %v1192_v44 }
 0x2e9   :  { %v2343_v48 = vpop.eup %2342  ;;  %1467 = vst [vmem:[%s2967_s7 + $0x20] sm:$0xff] %v2341_v46  ;;  %2358 = vrcp.f32 %v1375_v1  ;;  %v1615_v49 = vmul.f32 -1.442695, %v1198_v25 }
 0x2ea   :  { %v2345_v21 = vpop.eup %2344  ;;  %v1378_v50 = vadd.f32 1.0, %v2343_v48  ;;  %2360 = vpow2.f32 %v1612_v41  ;;  %v1614_v51 = vmul.f32 -1.442695, %v1193_v11 }
 0x2eb   :  { %v1377_v52 = vadd.f32 1.0, %v2345_v21  ;;  %2362 = vpow2.f32 %v1615_v49  ;;  %v1959_v53 = vpop.f32.mrb[34].mxu0 }
 0x2ec   :  { %2364 = vrcp.f32 %v1378_v50  ;;  %v1208_v54 = vadd.f32 %v1959_v53, %v2830_v35  ;;  %v1202_v55 = vpop.f32.mrb[35].mxu0 }
 0x2ed   :  { %v2347_v56 = vpop.eup %2346  ;;  %2366 = vrcp.f32 %v1377_v52  ;;  %v1203_v58 = vadd.f32 %v2830_v35, %v1202_v55 }
 0x2ee   :  { %v2349_v59 = vpop.eup %2348  ;;  %v1380_v61 = vadd.f32 1.0, %v2347_v56  ;;  %2368 = vpow2.f32 %v1614_v51  ;;  %v1617_v62 = vmul.f32 -1.442695, %v1208_v54 }
 0x2ef   :  { %v2351_v63 = vpop.eup %2350  ;;  %1470 = vst [vmem:[%s2967_s7 + $0x38] sm:$0xff] %v2349_v59  ;;  %v1616_v0 = vmul.f32 -1.442695, %v1203_v58  ;;  %v1962_v2 = vpop.f32.mrb[36].mxu0 }
 0x2f0   :  { %v2353_v31 = vpop.eup %2352  ;;  %1469 = vst [vmem:[%s2967_s7 + $0x30] sm:$0xff] %v2351_v63  ;;  %2370 = vrcp.f32 %v1380_v61  ;;  %v1218_v3 = vadd.f32 %v1962_v2, %v2830_v35  ;;  %v1212_v4 = vpop.f32.mrb[37].mxu0 }
 0x2f1   :  { %v2355_v5 = vpop.eup %2354  ;;  %v1379_v6 = vadd.f32 1.0, %v2353_v31  ;;  %2372 = vpow2.f32 %v1617_v62  ;;  %v1213_v7 = vadd.f32 %v2830_v35, %v1212_v4 }
 0x2f2   :  { %v2357_v34 = vpop.eup %2356  ;;  %v1382_v8 = vadd.f32 1.0, %v2355_v5  ;;  %2374 = vpow2.f32 %v1616_v0  ;;  %v1619_v30 = vmul.f32 -1.442695, %v1218_v3 }
 0x2f3   :  { %v2359_v10 = vpop.eup %2358  ;;  %1472 = vst [vmem:[%s2967_s7 + $0x48] sm:$0xff] %v2357_v34  ;;  %2376 = vrcp.f32 %v1379_v6  ;;  %v1618_v12 = vmul.f32 -1.442695, %v1213_v7  ;;  %v1965_v13 = vpop.f32.mrb[38].mxu0 }
 0x2f4   :  { %v2361_v47 = vpop.eup %2360  ;;  %1471 = vst [vmem:[%s2967_s7 + $0x40] sm:$0xff] %v2359_v10  ;;  %2378 = vrcp.f32 %v1382_v8  ;;  %v1228_v15 = vadd.f32 %v1965_v13, %v2830_v35  ;;  %v1222_v16 = vpop.f32.mrb[39].mxu0 }
 0x2f5   :  { %v2363_v45 = vpop.eup %2362  ;;  %v1381_v17 = vadd.f32 1.0, %v2361_v47  ;;  %2380 = vpow2.f32 %v1619_v30  ;;  %v1223_v18 = vadd.f32 %v2830_v35, %v1222_v16 }
 0x2f6   :  { %v2365_v60 = vpop.eup %2364  ;;  %v1384_v19 = vadd.f32 1.0, %v2363_v45  ;;  %2382 = vpow2.f32 %v1618_v12  ;;  %v1621_v20 = vmul.f32 -1.442695, %v1228_v15 }
 0x2f7   :  { %v2367_v22 = vpop.eup %2366  ;;  %1474 = vst [vmem:[%s2967_s7 + $0x58] sm:$0xff] %v2365_v60  ;;  %2384 = vrcp.f32 %v1381_v17  ;;  %v1620_v23 = vmul.f32 -1.442695, %v1223_v18  ;;  %v1968_v14 = vpop.f32.mrb[40].mxu0 }
 0x2f8   :  { %v2369_v24 = vpop.eup %2368  ;;  %1473 = vst [vmem:[%s2967_s7 + $0x50] sm:$0xff] %v2367_v22  ;;  %2386 = vrcp.f32 %v1384_v19  ;;  %v1238_v26 = vadd.f32 %v1968_v14, %v2830_v35  ;;  %v1232_v57 = vpop.f32.mrb[41].mxu0 }
 0x2f9   :  { %v1383_v27 = vadd.f32 1.0, %v2369_v24  ;;  %2388 = vpow2.f32 %v1621_v20  ;;  %v1233_v28 = vadd.f32 %v2830_v35, %v1232_v57 }
 0x2fa   :  { %v2371_v32 = vpop.eup %2370  ;;  %2390 = vpow2.f32 %v1620_v23  ;;  %v1623_v33 = vmul.f32 -1.442695, %v1238_v26 }
 0x2fb   :  { %v2373_v29 = vpop.eup %2372  ;;  %1476 = vst [vmem:[%s2967_s7 + $0x68] sm:$0xff] %v2371_v32  ;;  %2392 = vrcp.f32 %v1383_v27  ;;  %v1622_v36 = vmul.f32 -1.442695, %v1233_v28  ;;  %v1971_v37 = vpop.f32.mrb[42].mxu0 }
 0x2fc   :  { %v2375_v38 = vpop.eup %2374  ;;  %v1386_v9 = vadd.f32 1.0, %v2373_v29  ;;  %2394 = vpow2.f32 %v1623_v33  ;;  %v1248_v39 = vadd.f32 %v1971_v37, %v2830_v35  ;;  %v1242_v40 = vpop.f32.mrb[43].mxu0 }
 0x2fd   :  { %v2377_v41 = vpop.eup %2376  ;;  %v1385_v42 = vadd.f32 1.0, %v2375_v38  ;;  %2396 = vpow2.f32 %v1622_v36  ;;  %v1243_v43 = vadd.f32 %v2830_v35, %v1242_v40 }
 0x2fe   :  { %v2379_v1 = vpop.eup %2378  ;;  %1475 = vst [vmem:[%s2967_s7 + $0x60] sm:$0xff] %v2377_v41  ;;  %2398 = vrcp.f32 %v1386_v9  ;;  %v1625_v25 = vmul.f32 -1.442695, %v1248_v39 }
 0x2ff   :  { %v2381_v44 = vpop.eup %2380  ;;  %1478 = vst [vmem:[%s2967_s7 + $0x78] sm:$0xff] %v2379_v1  ;;  %2400 = vrcp.f32 %v1385_v42  ;;  %v1624_v46 = vmul.f32 -1.442695, %v1243_v43  ;;  %v1974_v11 = vpop.f32.mrb[44].mxu0 }
 0x300   :  { %v2383_v48 = vpop.eup %2382  ;;  %v1388_v49 = vadd.f32 1.0, %v2381_v44  ;;  %2402 = vpow2.f32 %v1625_v25  ;;  %v1258_v21 = vadd.f32 %v1974_v11, %v2830_v35  ;;  %v1252_v50 = vpop.f32.mrb[45].mxu0 }
 0x301   :  { %v2385_v51 = vpop.eup %2384  ;;  %v1387_v52 = vadd.f32 1.0, %v2383_v48  ;;  %2404 = vpow2.f32 %v1624_v46  ;;  %v1253_v53 = vadd.f32 %v2830_v35, %v1252_v50 }
 0x302   :  { %v2387_v54 = vpop.eup %2386  ;;  %1477 = vst [vmem:[%s2967_s7 + $0x70] sm:$0xff] %v2385_v51  ;;  %2406 = vrcp.f32 %v1388_v49  ;;  %v1627_v55 = vmul.f32 -1.442695, %v1258_v21 }
 0x303   :  { %v2389_v56 = vpop.eup %2388  ;;  %1480 = vst [vmem:[%s2967_s7 + $0x88] sm:$0xff] %v2387_v54  ;;  %2408 = vrcp.f32 %v1387_v52  ;;  %v1626_v58 = vmul.f32 -1.442695, %v1253_v53 }
 0x304   :  { %v2391_v59 = vpop.eup %2390  ;;  %v1390_v61 = vadd.f32 1.0, %v2389_v56  ;;  %2410 = vpow2.f32 %v1627_v55  ;;  %v1977_v62 = vpop.f32.mrb[46].mxu0 }
 0x305   :  { %v2393_v63 = vpop.eup %2392  ;;  %v1389_v0 = vadd.f32 1.0, %v2391_v59  ;;  %2412 = vpow2.f32 %v1626_v58  ;;  %v1268_v2 = vadd.f32 %v1977_v62, %v2830_v35  ;;  %v1262_v31 = vpop.f32.mrb[47].mxu0 }
 0x306   :  { %v2395_v3 = vpop.eup %2394  ;;  %1479 = vst [vmem:[%s2967_s7 + $0x80] sm:$0xff] %v2393_v63  ;;  %2414 = vrcp.f32 %v1390_v61  ;;  %v1263_v4 = vadd.f32 %v2830_v35, %v1262_v31 }
 0x307   :  { %v2397_v5 = vpop.eup %2396  ;;  %2416 = vrcp.f32 %v1389_v0  ;;  %v1392_v6 = vadd.f32 1.0, %v2395_v3  ;;  %v1629_v7 = vmul.f32 -1.442695, %v1268_v2 }
 0x308   :  { %v2399_v34 = vpop.eup %2398  ;;  %v1391_v8 = vadd.f32 1.0, %v2397_v5  ;;  %v1628_v30 = vmul.f32 -1.442695, %v1263_v4 }
 0x309   :  { %v2401_v10 = vpop.eup %2400  ;;  %1482 = vst [vmem:[%s2967_s7 + $0x98] sm:$0xff] %v2399_v34  ;;  %2418 = vrcp.f32 %v1392_v6 }
 0x30a   :  { %v2403_v12 = vpop.eup %2402  ;;  %1481 = vst [vmem:[%s2967_s7 + $0x90] sm:$0xff] %v2401_v10  ;;  %2420 = vrcp.f32 %v1391_v8 }
 0x30b   :  { %v2405_v35 = vpop.eup %2404  ;;  %v1394_v13 = vadd.f32 1.0, %v2403_v12  ;;  %2422 = vpow2.f32 %v1629_v7 }
 0x30c   :  { %v2407_v47 = vpop.eup %2406  ;;  %v1393_v15 = vadd.f32 1.0, %v2405_v35  ;;  %2424 = vpow2.f32 %v1628_v30 }
 0x30d   :  { %v2409_v16 = vpop.eup %2408  ;;  %1484 = vst [vmem:[%s2967_s7 + $0xa8] sm:$0xff] %v2407_v47  ;;  %2426 = vrcp.f32 %v1394_v13 }
 0x30e   :  { %v2411_v45 = vpop.eup %2410  ;;  %1483 = vst [vmem:[%s2967_s7 + $0xa0] sm:$0xff] %v2409_v16  ;;  %2428 = vrcp.f32 %v1393_v15 }
 0x30f   :  { %v2413_v17 = vpop.eup %2412  ;;  %v1396_v18 = vadd.f32 1.0, %v2411_v45 }
 0x310   :  { %v2415_v60 = vpop.eup %2414  ;;  %v1395_v19 = vadd.f32 1.0, %v2413_v17 }
 0x311   :  { %v2417_v20 = vpop.eup %2416  ;;  %1486 = vst [vmem:[%s2967_s7 + $0xb8] sm:$0xff] %v2415_v60  ;;  %2430 = vrcp.f32 %v1396_v18 }
 0x312   :  { %1485 = vst [vmem:[%s2967_s7 + $0xb0] sm:$0xff] %v2417_v20  ;;  %2432 = vrcp.f32 %v1395_v19 }
 0x313   :  { %v2419_v22 = vpop.eup %2418 }
 0x314   :  { %v2421_v23 = vpop.eup %2420  ;;  %1488 = vst [vmem:[%s2967_s7 + $0xc8] sm:$0xff] %v2419_v22 }
 0x315   :  { %v2423_v14 = vpop.eup %2422  ;;  %1487 = vst [vmem:[%s2967_s7 + $0xc0] sm:$0xff] %v2421_v23 }
 0x316   :  { %v2425_v24 = vpop.eup %2424  ;;  %v1398_v26 = vadd.f32 1.0, %v2423_v14 }
 0x317   :  { %v2427_v57 = vpop.eup %2426  ;;  %v1397_v27 = vadd.f32 1.0, %v2425_v24 }
 0x318   :  { %v2429_v28 = vpop.eup %2428  ;;  %1490 = vst [vmem:[%s2967_s7 + $0xd8] sm:$0xff] %v2427_v57  ;;  %2434 = vrcp.f32 %v1398_v26 }
 0x319   :  { %1489 = vst [vmem:[%s2967_s7 + $0xd0] sm:$0xff] %v2429_v28  ;;  %2436 = vrcp.f32 %v1397_v27 }
 0x31b   :  { %v2431_v32 = vpop.eup %2430 }
 0x31c   :  { %v2433_v33 = vpop.eup %2432  ;;  %1492 = vst [vmem:[%s2967_s7 + $0xe8] sm:$0xff] %v2431_v32 }
 0x31d   :  { %1491 = vst [vmem:[%s2967_s7 + $0xe0] sm:$0xff] %v2433_v33 }
 0x322   :  { %v2435_v29 = vpop.eup %2434 }
 0x323   :  { %v2437_v36 = vpop.eup %2436  ;;  %1494 = vst [vmem:[%s2967_s7 + $0xf8] sm:$0xff] %v2435_v29 }
 0x324   :  { %1493 = vst [vmem:[%s2967_s7 + $0xf0] sm:$0xff] %v2437_v36 }

</bundles_post_ra>
